<compile_context>
chip_gen: v6e
topology: v6e:2x2x1
jax: 0.10.0
libtpu: 0.0.40
codegen_flags: <defaults>
</compile_context>

<pallas_src>
import functools
import math

import jax
import jax.numpy as jnp
import numpy as np
from jax.experimental import pallas as pl
from jax.experimental.pallas import tpu as pltpu


# ----------------------------------------------------------------------------
# Generation-aware VMEM planning.
# ----------------------------------------------------------------------------
def _vmem_plan():
    """Returns (scratch/tile budget bytes, vmem_limit_bytes) per TPU gen."""
    kind = ""
    try:
        kind = jax.devices()[0].device_kind.lower()
    except Exception:
        pass
    if "v7" in kind:
        # 64 MiB physical VMEM per TensorCore: stay well inside it.
        return 36 * 1024 * 1024, 48 * 1024 * 1024
    # v5e / v6e: 128 MiB physical VMEM.
    return 80 * 1024 * 1024, 100 * 1024 * 1024


def _round_up(x, m):
    return ((x + m - 1) // m) * m


def _largest_aligned_divisor(total, align, cap):
    """Largest multiple of `align` dividing `total`, capped at `cap`."""
    best = align
    t = align
    limit = min(total, cap)
    while t <= limit:
        if total % t == 0:
            best = t
        t += align
    return best


def _select_warp_tile(HWp, C, H, W, budget_bytes, cap=8192):
    """Destination-pixel tile width from a per-step VMEM byte budget."""
    fixed = 2 * (C * H * W) * 2                 # double-buffered bf16 ref
    per_t = 4 * (C * H                          # Hh (f32)
                 + H + W                        # Ry, Cx (f32)
                 + 2 * C                        # out tile (double-buffered)
                 + 2 * 2                        # flow tile (double-buffered)
                 + 1                            # acc scratch
                 + 24)                          # coord / weight temporaries
    per_t += 2 * W                              # Cx bf16 copy
    t_cap = (budget_bytes - fixed) // max(per_t, 1)
    t_cap = max(128, min(t_cap, cap))
    return _largest_aligned_divisor(HWp, 128, t_cap)


# ----------------------------------------------------------------------------
# Deterministic stand-in "flow net" weights: 1x1 conv, Cin -> 2, as Python
# floats (baked into the kernel as scalar constants).
# ----------------------------------------------------------------------------
def _flow_weights(cin, cout=2):
    return tuple(
        tuple((k * cout + j - (cin * cout - 1) / 2.0) * 0.03
              for j in range(cout))
        for k in range(cin))


# ----------------------------------------------------------------------------
# Pallas kernel 1: lane-dense 1x1 conv (Cin -> 2), pixels on the lane axis.
# ----------------------------------------------------------------------------
def _flow_conv_kernel(x_ref, o_ref, *, w):
    cin = len(w)
    T = x_ref.shape[2]
    o0 = None
    o1 = None
    for k in range(cin):
        xk = x_ref[0, k:k + 1, :]                    # (1, T)
        if k == 0:
            o0 = xk * w[k][0]
            o1 = xk * w[k][1]
        else:
            o0 = o0 + xk * w[k][0]
            o1 = o1 + xk * w[k][1]
    ch = jax.lax.broadcasted_iota(jnp.int32, (2, T), 0)
    o_ref[...] = jnp.where(ch == 0, o0, o1).reshape(1, 2, T)


def flow_conv_pallas(x6):
    """x6: (N, Cin, HWp), HWp a multiple of 128 -> (N, 2, HWp)."""
    N, Cin, HWp = x6.shape
    # Large lane tile: this kernel was grid-step-overhead bound at Tc=2048.
    tc_cap = min(65536, (8 * 1024 * 1024) // max((Cin + 2) * 4 * 2, 1))
    Tc = _largest_aligned_divisor(HWp, 128, max(128, tc_cap))
    kernel = functools.partial(_flow_conv_kernel, w=_flow_weights(Cin))
    return pl.pallas_call(
        kernel,
        out_shape=jax.ShapeDtypeStruct((N, 2, HWp), jnp.float32),
        grid=(N, HWp // Tc),
        in_specs=[pl.BlockSpec((1, Cin, Tc), lambda n, t: (n, 0, t))],
        out_specs=pl.BlockSpec((1, 2, Tc), lambda n, t: (n, 0, t)),
        compiler_params=pltpu.CompilerParams(
            dimension_semantics=("parallel", "parallel")),
    )(x6)


# ----------------------------------------------------------------------------
# Pallas kernel 2: fused backwarp (bilinear grid_sample, zeros padding,
# align_corners=False) + alignment-mask threshold + masked L1 partial sums.
# Grid: (batch [parallel], tile-half [parallel], destination tiles [arbitrary]).
# ----------------------------------------------------------------------------
def _warp_l1_kernel(out_ref, ref_ref, flow_ref, loss_ref, acc_ref, *, H, W, HW):
    p = pl.program_id(1)
    t = pl.program_id(2)
    ntp = pl.num_programs(2)
    C = out_ref.shape[1]
    T = out_ref.shape[2]

    @pl.when(t == 0)
    def _init():
        acc_ref[...] = jnp.zeros_like(acc_ref)

    out_ct = out_ref[0]                               # (C, T)   f32
    ref_hw = ref_ref[0]                               # (C*H, W) bf16
    flw = flow_ref[0]                                 # (2, T)   f32
    fx = flw[0:1, :]                                  # (1, T)
    fy = flw[1:2, :]                                  # (1, T)

    # destination pixel coordinates for this tile (flat row-major order)
    t_global = p * ntp + t
    pix = t_global * T + jax.lax.broadcasted_iota(jnp.int32, (1, T), 1)
    lane_ok = pix < HW                                # padded-lane mask
    jj = (pix % W).astype(jnp.float32)
    ii = (pix // W).astype(jnp.float32)

    # base grid: linspace(-1 + 1/W, 1 - 1/W, W) == (2j + 1)/W - 1, plus flow
    # rescaled by 2/(W-1), 2/(H-1) (PyTorch backwarp).
    gx = (2.0 * jj + 1.0) / W - 1.0 + fx * (2.0 / (W - 1.0))
    gy = (2.0 * ii + 1.0) / H - 1.0 + fy * (2.0 / (H - 1.0))

    # un-normalize (grid_sample, align_corners=False)
    ix = ((gx + 1.0) * W - 1.0) * 0.5
    iy = ((gy + 1.0) * H - 1.0) * 0.5

    x0 = jnp.floor(ix)
    x1 = x0 + 1.0
    y0 = jnp.floor(iy)
    y1 = y0 + 1.0
    wx0 = x1 - ix
    wx1 = ix - x0
    wy0 = y1 - iy
    wy1 = iy - y0

    vx0 = jnp.where((x0 >= 0.0) & (x0 <= W - 1.0), 1.0, 0.0)
    vx1 = jnp.where((x1 >= 0.0) & (x1 <= W - 1.0), 1.0, 0.0)
    vy0 = jnp.where((y0 >= 0.0) & (y0 <= H - 1.0), 1.0, 0.0)
    vy1 = jnp.where((y1 >= 0.0) & (y1 <= H - 1.0), 1.0, 0.0)

    cx0 = jnp.clip(x0, 0.0, W - 1.0).astype(jnp.int32)
    cx1 = jnp.clip(x1, 0.0, W - 1.0).astype(jnp.int32)
    cy0 = jnp.clip(y0, 0.0, H - 1.0).astype(jnp.int32)
    cy1 = jnp.clip(y1, 0.0, H - 1.0).astype(jnp.int32)

    # Column (x) interpolation matrix with weight & zero-padding validity
    # folded directly into the select.  (Iotas are regenerated each step:
    # persisting them in VMEM scratch costs (W+H)*T*4 bytes on v7x for a
    # marginal VPU saving.)
    w_iota = jax.lax.broadcasted_iota(jnp.int32, (W, T), 0)
    Cx = (jnp.where(w_iota == cx0, wx0 * vx0, 0.0) +
          jnp.where(w_iota == cx1, wx1 * vx1, 0.0))            # (W, T) f32

    h_iota = jax.lax.broadcasted_iota(jnp.int32, (H, T), 0)
    Ry = (jnp.where(h_iota == cy0, wy0 * vy0, 0.0) +
          jnp.where(h_iota == cy1, wy1 * vy1, 0.0))            # (H, T) f32

    # Horizontal pass on the MXU in bf16 with f32 accumulate.
    Hh = jnp.dot(ref_hw, Cx.astype(jnp.bfloat16),
                 preferred_element_type=jnp.float32)           # (C*H, T) f32

    # Alignment mask = warp of the implicit "ones" channel, computed in f32
    # with the same op / accumulation order as the reference's four
    # grid_sample corner taps (avoids threshold flips).
    m_raw = ((wx0 * wy0) * (vx0 * vy0) + (wx1 * wy0) * (vx1 * vy0) +
             (wx0 * wy1) * (vx0 * vy1) + (wx1 * wy1) * (vx1 * vy1))
    mask = jnp.where((m_raw > 0.999) & lane_ok, 1.0, 0.0)      # (1, T)

    # Vertical pass + masked L1 in one shot:
    # |out*mask - warped*mask| == mask * |out - warped| (mask in {0, 1}).
    warped = jnp.sum(Hh.reshape(C, H, T) * Ry[None], axis=1)   # (C, T)
    contrib = mask * jnp.sum(jnp.abs(out_ct - warped),
                             axis=0, keepdims=True)            # (1, T)
    acc_ref[...] = acc_ref[...] + contrib

    # Deferred cross-lane reduction: once per (n, p) group.
    @pl.when(t == ntp - 1)
    def _fin():
        loss_ref[...] = jnp.sum(acc_ref[...], axis=1,
                                keepdims=True).reshape(1, 1, 1, 1)


def backwarp_l1_sum_pallas(out, ref, flow):
    """out, ref: (N, C, H, W); flow: (N, 2, H, W).
    Returns the scalar sum of mask * |out - backwarp(ref, flow)|."""
    N, C, H, W = out.shape
    assert H > 1 and W > 1, "backwarp flow rescale needs H > 1 and W > 1"

    # Orientation: the MXU contraction dim is W.  If H is 128-aligned and W is
    # not, transpose the whole problem (exactly equivalent under x<->y swap).
    if (W % 128 != 0) and (H % 128 == 0):
        out = jnp.swapaxes(out, 2, 3)
        ref = jnp.swapaxes(ref, 2, 3)
        flow = jnp.swapaxes(flow[:, ::-1], 2, 3)   # swap fx/fy, transpose
        H, W = W, H
    HW = H * W
    HWp = _round_up(HW, 128)

    out_f = out.reshape(N, C, HW).astype(jnp.float32)
    flow_f = flow.reshape(N, 2, HW).astype(jnp.float32)        # merged fx/fy
    if HWp != HW:
        pad = HWp - HW
        out_f = jnp.pad(out_f, ((0, 0), (0, 0), (0, pad)))
        flow_f = jnp.pad(flow_f, ((0, 0), (0, 0), (0, pad)))
    # ref is only consumed by the bf16 MXU pass: DMA it in bf16 (halves HBM
    # traffic and the resident double-buffered VMEM footprint).
    ref_rw = ref.reshape(N, C * H, W).astype(jnp.bfloat16)     # rows = (c, h)

    budget, vmem_limit = _vmem_plan()
    T = _select_warp_tile(HWp, C, H, W, budget)
    nt = HWp // T
    # Extra parallel axis so both v7x TensorCores work even when N == 1.
    P = 2 if (nt % 2 == 0 and nt >= 2) else 1
    ntp = nt // P

    kernel = functools.partial(_warp_l1_kernel, H=H, W=W, HW=HW)
    partials = pl.pallas_call(
        kernel,
        out_shape=jax.ShapeDtypeStruct((N, P, 1, 1), jnp.float32),
        grid=(N, P, ntp),
        in_specs=[
            pl.BlockSpec((1, C, T), lambda n, p, t: (n, 0, p * ntp + t)),
            pl.BlockSpec((1, C * H, W), lambda n, p, t: (n, 0, 0)),  # full ref
            pl.BlockSpec((1, 2, T), lambda n, p, t: (n, 0, p * ntp + t)),
        ],
        out_specs=pl.BlockSpec((1, 1, 1, 1), lambda n, p, t: (n, p, 0, 0)),
        scratch_shapes=[pltpu.VMEM((1, T), jnp.float32)],
        compiler_params=pltpu.CompilerParams(
            dimension_semantics=("parallel", "parallel", "arbitrary"),
            vmem_limit_bytes=vmem_limit),
    )(out_f, ref_rw, flow_f)
    return jnp.sum(partials)


# ----------------------------------------------------------------------------
# Glue: bilinear resize + PWCNet-style estimate() plumbing.
# ----------------------------------------------------------------------------
def _resize_bilinear(x, Hn, Wn):
    # TODO(synk): F.interpolate(mode='bilinear', align_corners=False) is done
    # with jax.image.resize (XLA) -- glue around the frozen flow net, not the
    # hot path, so it is not re-implemented as a Pallas kernel.
    N, C, _, _ = x.shape
    return jax.image.resize(x, (N, C, Hn, Wn), method="bilinear",
                            antialias=False)


def _flow_net_apply(first_p, second_p):
    """Stand-in frozen flow net: lane-dense 1x1 conv (2C -> 2) via Pallas."""
    N, C, Hp, Wp = first_p.shape
    x6 = jnp.concatenate([first_p, second_p], axis=1).reshape(N, 2 * C, Hp * Wp)
    return flow_conv_pallas(x6).reshape(N, 2, Hp, Wp)


def get_flow(ten_first, ten_second):
    """Replicates L1LiteISPLoss.estimate() plumbing around the flow net."""
    N, C, H, W = ten_first.shape
    Hp = int(math.floor(math.ceil(H / 64.0) * 64.0))
    Wp = int(math.floor(math.ceil(W / 64.0) * 64.0))
    first_p = _resize_bilinear(ten_first, Hp, Wp)
    second_p = _resize_bilinear(ten_second, Hp, Wp)
    flow = 20.0 * _resize_bilinear(_flow_net_apply(first_p, second_p), H, W)
    scale = jnp.array([W / Wp, H / Hp], jnp.float32).reshape(1, 2, 1, 1)
    flow = flow * scale
    return jax.lax.stop_gradient(flow)  # flow net is frozen / no_grad


def l1_liteisp_loss(inp, out, ref, loss_weight=1.0):
    """Forward of L1LiteISPLoss (default branch)."""
    del inp  # only provides the shape in the default branch
    N, C, H, W = out.shape
    flow = get_flow(out, ref)                        # (N, 2, H, W)
    total = backwarp_l1_sum_pallas(out, ref, flow)   # scalar sum
    return loss_weight * total / float(N * C * H * W)


# ----------------------------------------------------------------------------
# Pure-JAX reference of the backwarp + mask + L1 part (for verification).
# ----------------------------------------------------------------------------
def _reference_loss(out, ref, flow, loss_weight):
    N, C, H, W = out.shape
    HW = H * W
    jj = (2.0 * jnp.arange(W, dtype=jnp.float32) + 1.0) / W - 1.0
    ii = (2.0 * jnp.arange(H, dtype=jnp.float32) + 1.0) / H - 1.0
    gx = jj[None, None, :] + flow[:, 0] * (2.0 / (W - 1.0))
    gy = ii[None, :, None] + flow[:, 1] * (2.0 / (H - 1.0))
    ix = ((gx + 1.0) * W - 1.0) * 0.5
    iy = ((gy + 1.0) * H - 1.0) * 0.5
    x0 = jnp.floor(ix); y0 = jnp.floor(iy)
    x1 = x0 + 1.0; y1 = y0 + 1.0
    img = jnp.concatenate([ref, jnp.ones((N, 1, H, W), ref.dtype)], axis=1)
    img_flat = img.reshape(N, C + 1, HW)

    def tap(xf, yf, wgt):
        valid = ((xf >= 0) & (xf <= W - 1) &
                 (yf >= 0) & (yf <= H - 1)).astype(jnp.float32)
        xi = jnp.clip(xf, 0, W - 1).astype(jnp.int32)
        yi = jnp.clip(yf, 0, H - 1).astype(jnp.int32)
        flat = (yi * W + xi).reshape(N, HW)
        g = jax.vmap(lambda im, idx: im[:, idx])(img_flat, flat)
        return g * (wgt * valid).reshape(N, 1, HW)

    val = (tap(x0, y0, (x1 - ix) * (y1 - iy)) +
           tap(x1, y0, (ix - x0) * (y1 - iy)) +
           tap(x0, y1, (x1 - ix) * (iy - y0)) +
           tap(x1, y1, (ix - x0) * (iy - y0))).reshape(N, C + 1, H, W)
    mask = jnp.where(val[:, -1:] > 0.999, 1.0, 0.0)
    gt_warp = val[:, :-1] * mask
    out_masked = out * mask
    return loss_weight * jnp.mean(jnp.abs(out_masked - gt_warp))


if __name__ == "__main__":
    key = jax.random.PRNGKey(0)
    k1, k2, k3 = jax.random.split(key, 3)
    N, C, H, W = 2, 3, 16, 16
    inp = jax.random.normal(k1, (N, C, H, W), jnp.float32)
    out = jax.random.normal(k2, (N, C, H, W), jnp.float32)
    ref = jax.random.normal(k3, (N, C, H, W), jnp.float32)

    loss = l1_liteisp_loss(inp, out, ref, loss_weight=1.0)
    loss = jax.block_until_ready(loss)

    # Verify the fused Pallas kernel against a pure-JAX f32 reference.
    # Tolerance is relaxed slightly because the kernel's warp matmul runs in
    # bf16 (mask / loss accumulation remain f32).
    flow = get_flow(out, ref)
    ref_val = jax.block_until_ready(_reference_loss(out, ref, flow, 1.0))
    np.testing.assert_allclose(np.asarray(loss), np.asarray(ref_val),
                               rtol=5e-3, atol=5e-3)

    print("KERNEL_OK")
</pallas_src>

<mosaic_0001>
module attributes {stable_mosaic.version = 11 : i64} {
  func.func @_flow_conv_kernel(%arg0: i32, %arg1: i32, %arg2: memref<1x6x4096xf32, #tpu.memory_space<vmem>>, %arg3: memref<1x2x4096xf32, #tpu.memory_space<vmem>>) attributes {dimension_semantics = [#tpu.dimension_semantics<parallel>, #tpu.dimension_semantics<parallel>], iteration_bounds = array<i64: 2, 1>, scalar_prefetch = 0 : i64, scratch_operands = 0 : i64, tpu.core_type = #tpu.core_type<tc>, window_params = [{transform_indices = @transform_0, window_bounds = array<i64: 1, 6, 4096>}, {transform_indices = @transform_1, window_bounds = array<i64: 1, 2, 4096>}]} {
    %c0 = arith.constant 0 : index
    %c0_0 = arith.constant 0 : index
    %c0_1 = arith.constant 0 : index
    %0 = vector.load %arg2[%c0, %c0_0, %c0_1] : memref<1x6x4096xf32, #tpu.memory_space<vmem>>, vector<1x1x4096xf32>
    %1 = vector.shape_cast %0 : vector<1x1x4096xf32> to vector<1x4096xf32>
    %cst = arith.constant -1.650000e-01 : f32
    %2 = vector.broadcast %cst : f32 to vector<1x4096xf32>
    %3 = arith.mulf %1, %2 : vector<1x4096xf32>
    %cst_2 = arith.constant -1.350000e-01 : f32
    %4 = vector.broadcast %cst_2 : f32 to vector<1x4096xf32>
    %5 = arith.mulf %1, %4 : vector<1x4096xf32>
    %c0_3 = arith.constant 0 : index
    %c1 = arith.constant 1 : index
    %c0_4 = arith.constant 0 : index
    %6 = vector.load %arg2[%c0_3, %c1, %c0_4] : memref<1x6x4096xf32, #tpu.memory_space<vmem>>, vector<1x1x4096xf32>
    %7 = vector.shape_cast %6 : vector<1x1x4096xf32> to vector<1x4096xf32>
    %cst_5 = arith.constant -1.050000e-01 : f32
    %8 = vector.broadcast %cst_5 : f32 to vector<1x4096xf32>
    %9 = arith.mulf %7, %8 : vector<1x4096xf32>
    %10 = arith.addf %3, %9 : vector<1x4096xf32>
    %cst_6 = arith.constant -7.500000e-02 : f32
    %11 = vector.broadcast %cst_6 : f32 to vector<1x4096xf32>
    %12 = arith.mulf %7, %11 : vector<1x4096xf32>
    %13 = arith.addf %5, %12 : vector<1x4096xf32>
    %c0_7 = arith.constant 0 : index
    %c2 = arith.constant 2 : index
    %c0_8 = arith.constant 0 : index
    %14 = vector.load %arg2[%c0_7, %c2, %c0_8] : memref<1x6x4096xf32, #tpu.memory_space<vmem>>, vector<1x1x4096xf32>
    %15 = vector.shape_cast %14 : vector<1x1x4096xf32> to vector<1x4096xf32>
    %cst_9 = arith.constant -4.500000e-02 : f32
    %16 = vector.broadcast %cst_9 : f32 to vector<1x4096xf32>
    %17 = arith.mulf %15, %16 : vector<1x4096xf32>
    %18 = arith.addf %10, %17 : vector<1x4096xf32>
    %cst_10 = arith.constant -1.500000e-02 : f32
    %19 = vector.broadcast %cst_10 : f32 to vector<1x4096xf32>
    %20 = arith.mulf %15, %19 : vector<1x4096xf32>
    %21 = arith.addf %13, %20 : vector<1x4096xf32>
    %c0_11 = arith.constant 0 : index
    %c3 = arith.constant 3 : index
    %c0_12 = arith.constant 0 : index
    %22 = vector.load %arg2[%c0_11, %c3, %c0_12] : memref<1x6x4096xf32, #tpu.memory_space<vmem>>, vector<1x1x4096xf32>
    %23 = vector.shape_cast %22 : vector<1x1x4096xf32> to vector<1x4096xf32>
    %cst_13 = arith.constant 1.500000e-02 : f32
    %24 = vector.broadcast %cst_13 : f32 to vector<1x4096xf32>
    %25 = arith.mulf %23, %24 : vector<1x4096xf32>
    %26 = arith.addf %18, %25 : vector<1x4096xf32>
    %cst_14 = arith.constant 4.500000e-02 : f32
    %27 = vector.broadcast %cst_14 : f32 to vector<1x4096xf32>
    %28 = arith.mulf %23, %27 : vector<1x4096xf32>
    %29 = arith.addf %21, %28 : vector<1x4096xf32>
    %c0_15 = arith.constant 0 : index
    %c4 = arith.constant 4 : index
    %c0_16 = arith.constant 0 : index
    %30 = vector.load %arg2[%c0_15, %c4, %c0_16] : memref<1x6x4096xf32, #tpu.memory_space<vmem>>, vector<1x1x4096xf32>
    %31 = vector.shape_cast %30 : vector<1x1x4096xf32> to vector<1x4096xf32>
    %cst_17 = arith.constant 7.500000e-02 : f32
    %32 = vector.broadcast %cst_17 : f32 to vector<1x4096xf32>
    %33 = arith.mulf %31, %32 : vector<1x4096xf32>
    %34 = arith.addf %26, %33 : vector<1x4096xf32>
    %cst_18 = arith.constant 1.050000e-01 : f32
    %35 = vector.broadcast %cst_18 : f32 to vector<1x4096xf32>
    %36 = arith.mulf %31, %35 : vector<1x4096xf32>
    %37 = arith.addf %29, %36 : vector<1x4096xf32>
    %c0_19 = arith.constant 0 : index
    %c5 = arith.constant 5 : index
    %c0_20 = arith.constant 0 : index
    %38 = vector.load %arg2[%c0_19, %c5, %c0_20] : memref<1x6x4096xf32, #tpu.memory_space<vmem>>, vector<1x1x4096xf32>
    %39 = vector.shape_cast %38 : vector<1x1x4096xf32> to vector<1x4096xf32>
    %cst_21 = arith.constant 1.350000e-01 : f32
    %40 = vector.broadcast %cst_21 : f32 to vector<1x4096xf32>
    %41 = arith.mulf %39, %40 : vector<1x4096xf32>
    %42 = arith.addf %34, %41 : vector<1x4096xf32>
    %cst_22 = arith.constant 1.650000e-01 : f32
    %43 = vector.broadcast %cst_22 : f32 to vector<1x4096xf32>
    %44 = arith.mulf %39, %43 : vector<1x4096xf32>
    %45 = arith.addf %37, %44 : vector<1x4096xf32>
    %46 = tpu.iota {dimensions = array<i32: 0>} : vector<2x4096xi32>
    %c0_i32 = arith.constant 0 : i32
    %47 = vector.broadcast %c0_i32 : i32 to vector<2x4096xi32>
    %48 = arith.cmpi eq, %46, %47 : vector<2x4096xi32>
    %49 = vector.shape_cast %42 : vector<1x4096xf32> to vector<1x4096xf32>
    %50 = vector.broadcast %49 : vector<1x4096xf32> to vector<2x4096xf32>
    %51 = vector.shape_cast %45 : vector<1x4096xf32> to vector<1x4096xf32>
    %52 = vector.broadcast %51 : vector<1x4096xf32> to vector<2x4096xf32>
    %53 = arith.select %48, %50, %52 : vector<2x4096xi1>, vector<2x4096xf32>
    %54 = vector.shape_cast %53 : vector<2x4096xf32> to vector<1x2x4096xf32>
    %c0_23 = arith.constant 0 : index
    %c0_24 = arith.constant 0 : index
    %c0_25 = arith.constant 0 : index
    %55 = vector.load %arg3[%c0_23, %c0_24, %c0_25] : memref<1x2x4096xf32, #tpu.memory_space<vmem>>, vector<1x2x4096xf32>
    tpu.vector_store %arg3[%c0_23, %c0_24, %c0_25], %54 {strides = array<i32>} : memref<1x2x4096xf32, #tpu.memory_space<vmem>>, vector<1x2x4096xf32>,
    return
  }
  func.func @transform_0(%arg0: i32, %arg1: i32) -> (i32, i32, i32) {
    %c0_i32 = arith.constant 0 : i32
    %c0_i32_0 = arith.constant 0 : i32
    return %arg0, %c0_i32, %arg1 : i32, i32, i32
  }
  func.func @transform_1(%arg0: i32, %arg1: i32) -> (i32, i32, i32) {
    %c0_i32 = arith.constant 0 : i32
    %c0_i32_0 = arith.constant 0 : i32
    return %arg0, %c0_i32, %arg1 : i32, i32, i32
  }
}

</mosaic_0001>

<bundles_post_ra>
// kernel: tpu_custom_call.1
= control target key start
LH: loop header
LB: loop body
LE: loop exit
PB: predicated region body
PF: predicated region fallthrough
CT: control target
= control target key end

     0   :  { %6 = vsyncpa [#allocation3], 0  ;;  %s1517_s0 = inlined_call_operand.vmem [shape: f32[2,6,4096], index: 0, kind: input, shape index: {}]   ;;  %s1518_s1 = inlined_call_operand.hbm [shape: f32[2,2,4096], index: 1, kind: output, shape index: {}]  }
   0x1   :  { %8 = vsyncpa [#allocation3 + $0x1], 0  ;;  %s1176_s6 = smov 0   ;;  %s1178_s7 = smov 0  }
   0x2   :  { %s1180_s8 = smov 0   ;;  %s1182_s9 = smov 0  }
   0x3   :  { %s1184_s10 = smov 0   ;;  %s1186_s11 = smov 0  }
   0x4 LB: > { %s969_s12 = sadd.s32 4294967295, %s1162_s11   ;;  %s970_s13 = sadd.s32 4294967294, %s1162_s11   ;;  %s1162_s11 = sphi %s1186_s11, %s14_s11   ;;  %s1158_s10 = sphi %s1184_s10, %s1525_s10   ;;  %s1154_s9 = sphi %s1182_s9, %s1524_s9   ;;  %s1150_s8 = sphi %s1180_s8, %s1523_s8   ;;  %s1146_s7 = sphi %s1178_s7, %s1522_s7   ;;  %s1142_s6 = sphi %s1176_s6, %s1521_s6  }
   0x5   : > { %s26_s14 = sadd.s32 1, %s1158_s10  ;;  %s63_s15 = sadd.s32 1, %s1150_s8 }
   0x6   : > { %p28_p0 = scmp.ge.s32.totalorder %s26_s14, 2  ;;  %p73_p1 = scmp.ne.s32.totalorder %s1150_s8, %s1146_s7 }
   0x7   : > { %p74_p2 = scmp.eq.s32.totalorder %s969_s12, 1  ;;  %p79_p3 = scmp.ne.s32.totalorder %s1146_s7, %s1142_s6 }
   0x8   : > { %s1527_s14 = smov (%p28_p0, %s26_s14), 0  ;;  %p80_p5 = scmp.eq.s32.totalorder %s970_s13, 1 }
   0x9   : > { %p1216_p4 = por %p74_p2, %p73_p1  ;;  %s58_s17 = ssub.s32 %s1158_s10, %s1527_s14 }
   0xa   : > { %p973_p6 = scmp.ge.s32.totalorder %s1162_s11, 1  ;;  %p61_p7 = scmp.eq.s32.totalorder %s58_s17, 0 }
   0xb   : > { %p1223_p8 = por %p80_p5, %p79_p3  ;;  %p111_p9 = scmp.lt.s32.totalorder %s1162_s11, 3 }
   0xc   : > { %s1229_s19 = scalar_select %p61_p7, %s1150_s8, %s63_s15  }
   0xd   : > { %p112_p10 = pnand %p973_p6, %p111_p9 }
   0xe   : > { %p136_p11 = scmp.lt.s32.totalorder (!%p112_p10), %s1154_s9, 1  ;;  %s132_s25 = sand.u32 (!%p112_p10), 1, %s1146_s7  }
   0xf   : > { %115 = sbr.rel (%p112_p10) target bundleno = 118 (0x76), region = 24  ;;  %s1301_s26 = sshll.u32 (!%p112_p10), %s132_s25, 6 }
  0x10   : > { %s1343_s27 = scalar_lea.vmem (!%p112_p10), [#allocation2], %s1301_s26  ;;  %s1029_s28 = sshll.u32 (!%p112_p10), %s1154_s9, 10 }
  0x11   : > { %s893_s29 = sshll.u32 (!%p112_p10), %s1343_s27, 4  ;;  %s891_s3 = scalar_lea.hbm (!%p112_p10), %s1518_s1, %s1029_s28  ;;  %s894_s29 = int_to_ptr.vmem [resolvable:$true] %s893_s29 }
  0x12   : > { %s877_s4 = scalar_lea.sflag (!%p112_p10), [#allocation3], %s132_s25  ;;  %s1086_s5 = scalar_lea.vmem (!%p112_p10), %s894_s29, 1024 }
  0x13   : > { %p1087_p12 = scmp.ne.s32.totalorder (!%p112_p10), %s894_s29, %s1086_s5  ;;  %s1165_s12 = smov (!%p112_p10), [#allocation2]  }
  0x14   : > { %v329_v0 = vlaneseq  ;;  %s137_s20 = scalar_select %p136_p11, %s1154_s9, 1  ;;  %v1164_v13 = vmov 1983009808  }
  0x15   : > { %v727_v14 = vunpack.c.l.s4 %v1164_v13  ;;  %p1088_p13 = pnand %p1087_p12, %p1216_p4  ;;  %s1090_s9 = sshll.u32 %s1165_s12, 4  ;;  %s1091_s9 = int_to_ptr.vmem [resolvable:$false] %s1090_s9 }
  0x16   : > { %s1028_s21 = sshll.u32 %s137_s20, 8  ;;  %v1238_v1 = vshrl.u32 %v329_v0, 7  ;;  %s1092_s13 = scalar_lea.vmem %s1091_s9, 2048 }
  0x17   : > { %s1236_s24 = scalar_lea.vmem %s1517_s0, %s1028_s21  ;;  %v728_v35 = vunpack.c.0.s8 %v727_v14  ;;  %p1089_p0 = pneg %p1088_p13 }
  0x18   : > { %v146_v2 = vld [vmem:[%s1236_s24] ss:$8 sm:$0xf]  ;;  %v983_v5 = vld [vmem:[%s1236_s24 + $0x1] ss:$8 sm:$0xf]  ;;  %p1093_p1 = scmp.lt.s32.totalorder %s894_s29, %s1091_s9  ;;  %p1094_p2 = scmp.lt.s32.totalorder %s1092_s13, %s1086_s5 }
  0x19   : > { %v147_v3 = vld [vmem:[%s1236_s24] ss:$8 sm:$0xf0]  ;;  %v984_v6 = vld [vmem:[%s1236_s24 + $0x1] ss:$8 sm:$0xf0]  ;;  %v1279_v55 = vsub.s32 %v728_v35, %v1238_v1 }
  0x1a   : > { %v148_v4 = vor.u32 %v147_v3, %v146_v2  ;;  %v172_v7 = vor.u32 %v984_v6, %v983_v5  ;;  %v991_v8 = vld [vmem:[%s1236_s24 + $0x2] ss:$8 sm:$0xf]  ;;  %v1247_v17 = vsub.s32 0, %v1238_v1  ;;  %v1250_v18 = vsub.s32 1, %v1238_v1  ;;  %p1095_p3 = por %p1094_p2, %p1093_p1 }
  0x1b   : > { %v992_v9 = vld [vmem:[%s1236_s24 + $0x2] ss:$8 sm:$0xf0]  ;;  %v1253_v21 = vsub.s32 2, %v1238_v1  ;;  %v1256_v22 = vsub.s32 3, %v1238_v1  ;;  %vm331_vm0 = vcmp.eq.s32.totalorder %v1238_v1, 0 }
  0x1c   : > { %v161_v10 = vmul.f32 -0.165, %v148_v4  ;;  %v165_v11 = vmul.f32 -0.135, %v148_v4  ;;  %v204_v12 = vor.u32 %v992_v9, %v991_v8  ;;  %v185_v15 = vmul.f32 -0.105, %v172_v7  ;;  %p1096_p5 = pnand %p1095_p3, %p1089_p0 }
  0x1d   : > { %v193_v16 = vmul.f32 -0.075, %v172_v7  ;;  %v999_v25 = vld [vmem:[%s1236_s24 + $0x3] ss:$8 sm:$0xf]  ;;  %v1266_v39 = vsub.s32 4, %v1238_v1 }
  0x1e   : > { %v217_v19 = vmul.f32 -0.045, %v204_v12  ;;  %v225_v20 = vmul.f32 -0.015, %v204_v12  ;;  %v189_v23 = vadd.f32 %v185_v15, %v161_v10  ;;  %v1269_v42 = vsub.s32 5, %v1238_v1 }
  0x1f   : > { %v197_v24 = vadd.f32 %v193_v16, %v165_v11  ;;  %v1000_v26 = vld [vmem:[%s1236_s24 + $0x3] ss:$8 sm:$0xf0]  ;;  %v1007_v28 = vld [vmem:[%s1236_s24 + $0x4] ss:$8 sm:$0xf] }
  0x20   : > { %v236_v27 = vor.u32 %v1000_v26, %v999_v25  ;;  %v1008_v29 = vld [vmem:[%s1236_s24 + $0x4] ss:$8 sm:$0xf0]  ;;  %v221_v30 = vadd.f32 %v217_v19, %v189_v23  ;;  %v1015_v33 = vld [vmem:[%s1236_s24 + $0x5] ss:$8 sm:$0xf] }
  0x21   : > { %v229_v31 = vadd.f32 %v225_v20, %v197_v24  ;;  %v268_v32 = vor.u32 %v1008_v29, %v1007_v28  ;;  %v1016_v34 = vld [vmem:[%s1236_s24 + $0x5] ss:$8 sm:$0xf0]  ;;  %v1272_v43 = vsub.s32 6, %v1238_v1  ;;  %v1284_v61 = vsub.s32 7, %v1238_v1 }
  0x22   : > { %v249_v36 = vmul.f32 0.015, %v236_v27  ;;  %v257_v37 = vmul.f32 0.045, %v236_v27  ;;  %v300_v38 = vor.u32 %v1016_v34, %v1015_v33 }
  0x23   : > { %v281_v40 = vmul.f32 0.075, %v268_v32  ;;  %v289_v41 = vmul.f32 0.105, %v268_v32 }
  0x24   : > { %v253_v44 = vadd.f32 %v249_v36, %v221_v30  ;;  %v261_v45 = vadd.f32 %v257_v37, %v229_v31  ;;  %v313_v46 = vmul.f32 0.135, %v300_v38  ;;  %v321_v47 = vmul.f32 0.165, %v300_v38 }
  0x25   : > { %v977_v48 = vld [vmem:[%s1236_s24 + $0x40] ss:$8 sm:$0xf]  ;;  %v985_v53 = vld [vmem:[%s1236_s24 + $0x41] ss:$8 sm:$0xf] }
  0x26   : > { %v978_v49 = vld [vmem:[%s1236_s24 + $0x40] ss:$8 sm:$0xf0]  ;;  %v285_v50 = vadd.f32 %v281_v40, %v253_v44  ;;  %v293_v51 = vadd.f32 %v289_v41, %v261_v45  ;;  %v986_v54 = vld [vmem:[%s1236_s24 + $0x41] ss:$8 sm:$0xf0] }
  0x27   : > { %v152_v52 = vor.u32 %v978_v49, %v977_v48  ;;  %v176_v56 = vor.u32 %v986_v54, %v985_v53  ;;  %v993_v57 = vld [vmem:[%s1236_s24 + $0x42] ss:$8 sm:$0xf]  ;;  %v1001_v24 = vld [vmem:[%s1236_s24 + $0x43] ss:$8 sm:$0xf] }
  0x28   : > { %v994_v58 = vld [vmem:[%s1236_s24 + $0x42] ss:$8 sm:$0xf0]  ;;  %v317_v59 = vadd.f32 %v313_v46, %v285_v50  ;;  %v325_v60 = vadd.f32 %v321_v47, %v293_v51  ;;  %v1002_v29 = vld [vmem:[%s1236_s24 + $0x43] ss:$8 sm:$0xf0] }
  0x29   : > { %v162_v62 = vmul.f32 -0.165, %v152_v52  ;;  %v166_v63 = vmul.f32 -0.135, %v152_v52  ;;  %v186_v0 = vmul.f32 -0.105, %v176_v56  ;;  %v208_v3 = vor.u32 %v994_v58, %v993_v57 }
  0x2a   : > { %v194_v2 = vmul.f32 -0.075, %v176_v56  ;;  %v339_v4 = vrot.slane %v317_v59, %v1247_v17  ;;  %v343_v5 = vrot.slane %v317_v59, %v1250_v18  ;;  %v347_v6 = vrot.slane %v317_v59, %v1253_v21  ;;  %v1009_v30 = vld [vmem:[%s1236_s24 + $0x44] ss:$8 sm:$0xf] }
  0x2b   : > { %v351_v7 = vrot.slane %v317_v59, %v1256_v22  ;;  %v503_v8 = vrot.slane %v325_v60, %v1247_v17  ;;  %v507_v9 = vrot.slane %v325_v60, %v1250_v18  ;;  %v511_v10 = vrot.slane %v325_v60, %v1253_v21  ;;  %v1010_v35 = vld [vmem:[%s1236_s24 + $0x44] ss:$8 sm:$0xf0]  ;;  %v1017_v36 = vld [vmem:[%s1236_s24 + $0x45] ss:$8 sm:$0xf] }
  0x2c   : > { %v515_v11 = vrot.slane %v325_v60, %v1256_v22  ;;  %v355_v12 = vrot.slane %v317_v59, %v1266_v39  ;;  %v359_v13 = vrot.slane %v317_v59, %v1269_v42  ;;  %v363_v14 = vrot.slane %v317_v59, %v1272_v43  ;;  %v1018_v44 = vld [vmem:[%s1236_s24 + $0x45] ss:$8 sm:$0xf0]  ;;  %v979_v45 = vld [vmem:[%s1236_s24 + $0x80] ss:$8 sm:$0xf] }
  0x2d   : > { %v367_v15 = vrot.slane %v317_v59, %v1284_v61  ;;  %v660_v16 = vsel %vm331_vm0, %v339_v4, %v503_v8  ;;  %v661_v19 = vsel %vm331_vm0, %v343_v5, %v507_v9  ;;  %v662_v20 = vsel %vm331_vm0, %v347_v6, %v511_v10  ;;  %v980_v50 = vld [vmem:[%s1236_s24 + $0x80] ss:$8 sm:$0xf0]  ;;  %v987_v56 = vld [vmem:[%s1236_s24 + $0x81] ss:$8 sm:$0xf] }
  0x2e   : > { %v663_v23 = vsel %vm331_vm0, %v351_v7, %v515_v11  ;;  %v724_v25 = vcombine.low %v660_v16, %v661_v19  ;;  %v519_v27 = vrot.slane %v325_v60, %v1266_v39  ;;  %v523_v28 = vrot.slane %v325_v60, %v1269_v42  ;;  %v988_v57 = vld [vmem:[%s1236_s24 + $0x81] ss:$8 sm:$0xf0]  ;;  %v995_v58 = vld [vmem:[%s1236_s24 + $0x82] ss:$8 sm:$0xf] }
  0x2f   : > { %v725_v26 = vcombine.low %v662_v20, %v663_v23  ;;  %v527_v31 = vrot.slane %v325_v60, %v1272_v43  ;;  %v531_v32 = vrot.slane %v325_v60, %v1284_v61  ;;  %v190_v33 = vadd.f32 %v186_v0, %v162_v62  ;;  %v996_v59 = vld [vmem:[%s1236_s24 + $0x82] ss:$8 sm:$0xf0]  ;;  %v1004_v4 = vld [vmem:[%s1236_s24 + $0x83] ss:$8 sm:$0xf0] }
  0x30   : > { %v198_v34 = vadd.f32 %v194_v2, %v166_v63  ;;  %v732_v37 = vrot.slane %v724_v25, %v1279_v55  ;;  %v664_v40 = vsel %vm331_vm0, %v355_v12, %v519_v27  ;;  %v665_v41 = vsel %vm331_vm0, %v359_v13, %v523_v28  ;;  %v1003_v2 = vld [vmem:[%s1236_s24 + $0x83] ss:$8 sm:$0xf]  ;;  %v1011_v5 = vld [vmem:[%s1236_s24 + $0x84] ss:$8 sm:$0xf] }
  0x31   : > { %v739_v38 = vrot.slane %v725_v26, %v1279_v55  ;;  %v666_v46 = vsel %vm331_vm0, %v363_v14, %v527_v31  ;;  %v667_v47 = vsel %vm331_vm0, %v367_v15, %v531_v32  ;;  %v741_v48 = vcombine.low %v664_v40, %v665_v41  ;;  %v1012_v6 = vld [vmem:[%s1236_s24 + $0x84] ss:$8 sm:$0xf0]  ;;  %v1019_v10 = vld [vmem:[%s1236_s24 + $0x85] ss:$8 sm:$0xf] }
  0x32   : > { %v218_v49 = vmul.f32 -0.045, %v208_v3  ;;  %v742_v52 = vcombine.low %v666_v46, %v667_v47  ;;  %v226_v53 = vmul.f32 -0.015, %v208_v3  ;;  %v240_v54 = vor.u32 %v1002_v29, %v1001_v24 }
  0x33   : > { %v740_v51 = vcombine.low %v732_v37, %v739_v38  ;;  %v749_v60 = vrot.slane %v741_v48, %v1279_v55  ;;  %v272_v63 = vor.u32 %v1010_v35, %v1009_v30  ;;  %v304_v0 = vor.u32 %v1018_v44, %v1017_v36  ;;  %v1020_v23 = vld [vmem:[%s1236_s24 + $0x85] ss:$8 sm:$0xf0] }
  0x34   : > { %v222_v62 = vadd.f32 %v218_v49, %v190_v33  ;;  %v756_v3 = vrot.slane %v742_v52, %v1279_v55  ;;  %v230_v7 = vadd.f32 %v226_v53, %v198_v34  ;;  %v250_v8 = vmul.f32 0.015, %v240_v54 }
  0x35   : > { %868 = vst [vmem:[%s1343_s27] sm:$0xff] %v740_v51  ;;  %v258_v9 = vmul.f32 0.045, %v240_v54  ;;  %v282_v11 = vmul.f32 0.075, %v272_v63  ;;  %v290_v12 = vmul.f32 0.105, %v272_v63  ;;  %v156_v14 = vor.u32 %v980_v50, %v979_v45 }
  0x36   : > { %v314_v13 = vmul.f32 0.135, %v304_v0  ;;  %v757_v15 = vcombine.low %v749_v60, %v756_v3  ;;  %v254_v16 = vadd.f32 %v250_v8, %v222_v62  ;;  %v322_v20 = vmul.f32 0.165, %v304_v0 }
  0x37   : > { %v262_v19 = vadd.f32 %v258_v9, %v230_v7  ;;  %v163_v24 = vmul.f32 -0.165, %v156_v14  ;;  %v167_v25 = vmul.f32 -0.135, %v156_v14  ;;  %v180_v26 = vor.u32 %v988_v57, %v987_v56 }
  0x38   : > { %v212_v27 = vor.u32 %v996_v59, %v995_v58  ;;  %869 = vst [vmem:[%s1343_s27 + $0x8] sm:$0xff] %v757_v15  ;;  %v286_v28 = vadd.f32 %v282_v11, %v254_v16  ;;  %v244_v30 = vor.u32 %v1004_v4, %v1003_v2  ;;  %v276_v31 = vor.u32 %v1012_v6, %v1011_v5  ;;  %v982_v11 = vld [vmem:[%s1236_s24 + $0xc0] ss:$8 sm:$0xf0] }
  0x39   : > { %v294_v29 = vadd.f32 %v290_v12, %v262_v19  ;;  %v187_v32 = vmul.f32 -0.105, %v180_v26  ;;  %v195_v33 = vmul.f32 -0.075, %v180_v26  ;;  %v308_v35 = vor.u32 %v1020_v23, %v1019_v10 }
  0x3a   : > { %v219_v34 = vmul.f32 -0.045, %v212_v27  ;;  %v318_v36 = vadd.f32 %v314_v13, %v286_v28  ;;  %v227_v38 = vmul.f32 -0.015, %v212_v27  ;;  %v251_v40 = vmul.f32 0.015, %v244_v30 }
  0x3b   : > { %v326_v37 = vadd.f32 %v322_v20, %v294_v29  ;;  %v191_v41 = vadd.f32 %v187_v32, %v163_v24  ;;  %v199_v44 = vadd.f32 %v195_v33, %v167_v25  ;;  %v259_v45 = vmul.f32 0.045, %v244_v30  ;;  %v981_v10 = vld [vmem:[%s1236_s24 + $0xc0] ss:$8 sm:$0xf] }
  0x3c   : > { %v283_v46 = vmul.f32 0.075, %v276_v31  ;;  %v371_v47 = vrot.slane %v318_v36, %v1247_v17  ;;  %v375_v48 = vrot.slane %v318_v36, %v1250_v18  ;;  %v379_v49 = vrot.slane %v318_v36, %v1253_v21  ;;  %v989_v12 = vld [vmem:[%s1236_s24 + $0xc1] ss:$8 sm:$0xf] }
  0x3d   : > { %v383_v50 = vrot.slane %v318_v36, %v1256_v22  ;;  %v535_v51 = vrot.slane %v326_v37, %v1247_v17  ;;  %v539_v52 = vrot.slane %v326_v37, %v1250_v18  ;;  %v543_v53 = vrot.slane %v326_v37, %v1253_v21  ;;  %v990_v13 = vld [vmem:[%s1236_s24 + $0xc1] ss:$8 sm:$0xf0]  ;;  %v997_v20 = vld [vmem:[%s1236_s24 + $0xc2] ss:$8 sm:$0xf] }
  0x3e   : > { %v547_v54 = vrot.slane %v326_v37, %v1256_v22  ;;  %v387_v56 = vrot.slane %v318_v36, %v1266_v39  ;;  %v391_v57 = vrot.slane %v318_v36, %v1269_v42  ;;  %v395_v58 = vrot.slane %v318_v36, %v1272_v43  ;;  %v998_v23 = vld [vmem:[%s1236_s24 + $0xc2] ss:$8 sm:$0xf0]  ;;  %v1005_v24 = vld [vmem:[%s1236_s24 + $0xc3] ss:$8 sm:$0xf] }
  0x3f   : > { %v399_v59 = vrot.slane %v318_v36, %v1284_v61  ;;  %v668_v60 = vsel %vm331_vm0, %v371_v47, %v535_v51  ;;  %v669_v62 = vsel %vm331_vm0, %v375_v48, %v539_v52  ;;  %v670_v63 = vsel %vm331_vm0, %v379_v49, %v543_v53  ;;  %v1006_v29 = vld [vmem:[%s1236_s24 + $0xc3] ss:$8 sm:$0xf0]  ;;  %v1013_v30 = vld [vmem:[%s1236_s24 + $0xc4] ss:$8 sm:$0xf] }
  0x40   : > { %v671_v0 = vsel %vm331_vm0, %v383_v50, %v547_v54  ;;  %v758_v2 = vcombine.low %v668_v60, %v669_v62  ;;  %v551_v5 = vrot.slane %v326_v37, %v1266_v39  ;;  %v555_v6 = vrot.slane %v326_v37, %v1269_v42 }
  0x41   : > { %v759_v4 = vcombine.low %v670_v63, %v671_v0  ;;  %v559_v3 = vrot.slane %v326_v37, %v1272_v43  ;;  %v563_v7 = vrot.slane %v326_v37, %v1284_v61  ;;  %v223_v8 = vadd.f32 %v219_v34, %v191_v41  ;;  %v1014_v37 = vld [vmem:[%s1236_s24 + $0xc4] ss:$8 sm:$0xf0] }
  0x42   : > { %v231_v9 = vadd.f32 %v227_v38, %v199_v44  ;;  %v766_v14 = vrot.slane %v758_v2, %v1279_v55  ;;  %v672_v16 = vsel %vm331_vm0, %v387_v56, %v551_v5  ;;  %v673_v19 = vsel %vm331_vm0, %v391_v57, %v555_v6 }
  0x43   : > { %v773_v15 = vrot.slane %v759_v4, %v1279_v55  ;;  %v674_v25 = vsel %vm331_vm0, %v395_v58, %v559_v3  ;;  %v675_v26 = vsel %vm331_vm0, %v399_v59, %v563_v7  ;;  %v775_v27 = vcombine.low %v672_v16, %v673_v19 }
  0x44   : > { %v255_v28 = vadd.f32 %v251_v40, %v223_v8  ;;  %v776_v33 = vcombine.low %v674_v25, %v675_v26  ;;  %v263_v34 = vadd.f32 %v259_v45, %v231_v9  ;;  %v291_v36 = vmul.f32 0.105, %v276_v31 }
  0x45   : > { %v774_v32 = vcombine.low %v766_v14, %v773_v15  ;;  %v783_v38 = vrot.slane %v775_v27, %v1279_v55  ;;  %v315_v44 = vmul.f32 0.135, %v308_v35  ;;  %v323_v47 = vmul.f32 0.165, %v308_v35 }
  0x46   : > { %v287_v41 = vadd.f32 %v283_v46, %v255_v28  ;;  %v790_v48 = vrot.slane %v776_v33, %v1279_v55  ;;  %v295_v49 = vadd.f32 %v291_v36, %v263_v34  ;;  %v160_v50 = vor.u32 %v982_v11, %v981_v10 }
  0x47   : > { %870 = vst [vmem:[%s1343_s27 + $0x10] sm:$0xff] %v774_v32  ;;  %v184_v51 = vor.u32 %v990_v13, %v989_v12  ;;  %v216_v52 = vor.u32 %v998_v23, %v997_v20  ;;  %v248_v53 = vor.u32 %v1006_v29, %v1005_v24  ;;  %v280_v54 = vor.u32 %v1014_v37, %v1013_v30  ;;  %v1021_v30 = vld [vmem:[%s1236_s24 + $0xc5] ss:$8 sm:$0xf] }
  0x48   : > { %v319_v40 = vadd.f32 %v315_v44, %v287_v41  ;;  %v791_v56 = vcombine.low %v783_v38, %v790_v48  ;;  %v327_v45 = vadd.f32 %v323_v47, %v295_v49  ;;  %v164_v31 = vmul.f32 -0.165, %v160_v50  ;;  %v1022_v37 = vld [vmem:[%s1236_s24 + $0xc5] ss:$8 sm:$0xf0] }
  0x49   : > { %v168_v57 = vmul.f32 -0.135, %v160_v50  ;;  %v188_v16 = vmul.f32 -0.105, %v184_v51  ;;  %v196_v19 = vmul.f32 -0.075, %v184_v51 }
  0x4a   : > { %v403_v58 = vrot.slane %v319_v40, %v1247_v17  ;;  %v407_v46 = vrot.slane %v319_v40, %v1250_v18  ;;  %v411_v35 = vrot.slane %v319_v40, %v1253_v21  ;;  %v415_v59 = vrot.slane %v319_v40, %v1256_v22  ;;  %871 = vst [vmem:[%s1343_s27 + $0x18] sm:$0xff] %v791_v56 }
  0x4b   : > { %v567_v60 = vrot.slane %v327_v45, %v1247_v17  ;;  %v571_v62 = vrot.slane %v327_v45, %v1250_v18  ;;  %v575_v63 = vrot.slane %v327_v45, %v1253_v21  ;;  %v579_v0 = vrot.slane %v327_v45, %v1256_v22 }
  0x4c   : > { %v419_v2 = vrot.slane %v319_v40, %v1266_v39  ;;  %v423_v4 = vrot.slane %v319_v40, %v1269_v42  ;;  %v427_v5 = vrot.slane %v319_v40, %v1272_v43  ;;  %v431_v6 = vrot.slane %v319_v40, %v1284_v61 }
  0x4d   : > { %v676_v3 = vsel %vm331_vm0, %v403_v58, %v567_v60  ;;  %v677_v7 = vsel %vm331_vm0, %v407_v46, %v571_v62  ;;  %v678_v8 = vsel %vm331_vm0, %v411_v35, %v575_v63  ;;  %v679_v9 = vsel %vm331_vm0, %v415_v59, %v579_v0 }
  0x4e   : > { %v792_v10 = vcombine.low %v676_v3, %v677_v7  ;;  %v793_v11 = vcombine.low %v678_v8, %v679_v9  ;;  %v583_v12 = vrot.slane %v327_v45, %v1266_v39  ;;  %v587_v13 = vrot.slane %v327_v45, %v1269_v42 }
  0x4f   : > { %v591_v14 = vrot.slane %v327_v45, %v1272_v43  ;;  %v595_v15 = vrot.slane %v327_v45, %v1284_v61  ;;  %v192_v29 = vadd.f32 %v188_v16, %v164_v31  ;;  %v200_v34 = vadd.f32 %v196_v19, %v168_v57 }
  0x50   : > { %v800_v20 = vrot.slane %v792_v10, %v1279_v55  ;;  %v807_v23 = vrot.slane %v793_v11, %v1279_v55  ;;  %v680_v24 = vsel %vm331_vm0, %v419_v2, %v583_v12  ;;  %v681_v25 = vsel %vm331_vm0, %v423_v4, %v587_v13 }
  0x51   : > { %v682_v26 = vsel %vm331_vm0, %v427_v5, %v591_v14  ;;  %v683_v27 = vsel %vm331_vm0, %v431_v6, %v595_v15  ;;  %v809_v28 = vcombine.low %v680_v24, %v681_v25  ;;  %v220_v36 = vmul.f32 -0.045, %v216_v52 }
  0x52   : > { %v808_v32 = vcombine.low %v800_v20, %v807_v23  ;;  %v810_v33 = vcombine.low %v682_v26, %v683_v27  ;;  %v228_v41 = vmul.f32 -0.015, %v216_v52  ;;  %v252_v44 = vmul.f32 0.015, %v248_v53 }
  0x53   : > { %v817_v38 = vrot.slane %v809_v28, %v1279_v55  ;;  %v260_v47 = vmul.f32 0.045, %v248_v53  ;;  %v224_v49 = vadd.f32 %v220_v36, %v192_v29  ;;  %v284_v50 = vmul.f32 0.075, %v280_v54 }
  0x54   : > { %872 = vst [vmem:[%s1343_s27 + $0x20] sm:$0xff] %v808_v32  ;;  %v824_v48 = vrot.slane %v810_v33, %v1279_v55  ;;  %v232_v51 = vadd.f32 %v228_v41, %v200_v34  ;;  %v292_v40 = vmul.f32 0.105, %v280_v54  ;;  %v312_v56 = vor.u32 %v1022_v37, %v1021_v30 }
  0x55   : > { %v256_v31 = vadd.f32 %v252_v44, %v224_v49 }
  0x56   : > { %v825_v45 = vcombine.low %v817_v38, %v824_v48  ;;  %v264_v58 = vadd.f32 %v260_v47, %v232_v51  ;;  %v316_v57 = vmul.f32 0.135, %v312_v56  ;;  %v324_v46 = vmul.f32 0.165, %v312_v56 }
  0x57   : > { %v288_v35 = vadd.f32 %v284_v50, %v256_v31 }
  0x58   : > { %873 = vst [vmem:[%s1343_s27 + $0x28] sm:$0xff] %v825_v45  ;;  %v296_v59 = vadd.f32 %v292_v40, %v264_v58 }
  0x59   : > { %v320_v60 = vadd.f32 %v316_v57, %v288_v35 }
  0x5a   : > { %v328_v52 = vadd.f32 %v324_v46, %v296_v59 }
  0x5b   : > { %v435_v53 = vrot.slane %v320_v60, %v1247_v17  ;;  %v439_v62 = vrot.slane %v320_v60, %v1250_v18  ;;  %v443_v63 = vrot.slane %v320_v60, %v1253_v21  ;;  %v447_v0 = vrot.slane %v320_v60, %v1256_v22 }
  0x5c   : > { %v599_v54 = vrot.slane %v328_v52, %v1247_v17  ;;  %v603_v2 = vrot.slane %v328_v52, %v1250_v18  ;;  %v607_v4 = vrot.slane %v328_v52, %v1253_v21  ;;  %v611_v5 = vrot.slane %v328_v52, %v1256_v22 }
  0x5d   : > { %v451_v6 = vrot.slane %v320_v60, %v1266_v39  ;;  %v455_v3 = vrot.slane %v320_v60, %v1269_v42  ;;  %v459_v7 = vrot.slane %v320_v60, %v1272_v43  ;;  %v463_v8 = vrot.slane %v320_v60, %v1284_v61 }
  0x5e   : > { %v684_v9 = vsel %vm331_vm0, %v435_v53, %v599_v54  ;;  %v685_v17 = vsel %vm331_vm0, %v439_v62, %v603_v2  ;;  %v686_v18 = vsel %vm331_vm0, %v443_v63, %v607_v4  ;;  %v687_v21 = vsel %vm331_vm0, %v447_v0, %v611_v5 }
  0x5f   : > { %v826_v22 = vcombine.low %v684_v9, %v685_v17  ;;  %v827_v10 = vcombine.low %v686_v18, %v687_v21  ;;  %v615_v11 = vrot.slane %v328_v52, %v1266_v39  ;;  %v619_v12 = vrot.slane %v328_v52, %v1269_v42 }
  0x60   : > { %v623_v13 = vrot.slane %v328_v52, %v1272_v43  ;;  %v627_v14 = vrot.slane %v328_v52, %v1284_v61 }
  0x61   : > { %v834_v15 = vrot.slane %v826_v22, %v1279_v55  ;;  %v841_v16 = vrot.slane %v827_v10, %v1279_v55  ;;  %v688_v19 = vsel %vm331_vm0, %v451_v6, %v615_v11  ;;  %v689_v20 = vsel %vm331_vm0, %v455_v3, %v619_v12 }
  0x62   : > { %v690_v39 = vsel %vm331_vm0, %v459_v7, %v623_v13  ;;  %v691_v42 = vsel %vm331_vm0, %v463_v8, %v627_v14  ;;  %v843_v43 = vcombine.low %v688_v19, %v689_v20 }
  0x63   : > { %v842_v61 = vcombine.low %v834_v15, %v841_v16  ;;  %v844_v23 = vcombine.low %v690_v39, %v691_v42 }
  0x64   : > { %v851_v24 = vrot.slane %v843_v43, %v1279_v55 }
  0x65   : > { %874 = vst [vmem:[%s1343_s27 + $0x30] sm:$0xff] %v842_v61  ;;  %v858_v25 = vrot.slane %v844_v23, %v1279_v55 }
  0x67   : > { %v859_v26 = vcombine.low %v851_v24, %v858_v25 }
  0x69   : > { %875 = vst [vmem:[%s1343_s27 + $0x38] sm:$0xff] %v859_v26 }
  0x6a   : > { %1099 = shalt.err (!%p1096_p5)
}
  0x6b   : > { %s1100_s15 = scalar_lea.hbm %s891_s3, 1024  ;;  %s1104_s21 = scalar_lea.hbm %s1518_s1, 2048 }
  0x6c   : > { %p1101_p6 = scmp.ne.s32.totalorder %s891_s3, %s1100_s15  ;;  %p1105_p10 = scmp.lt.s32.totalorder %s891_s3, %s1518_s1 }
  0x6d   : > { %p1106_p11 = scmp.lt.s32.totalorder %s1104_s21, %s1100_s15 }
  0x6e   : > { %p1102_p7 = pnand %p1101_p6, %p1216_p4 }
  0x6f   : > { %p1107_p12 = por %p1106_p11, %p1105_p10 }
  0x70   : > { %p1103_p9 = pneg %p1102_p7 }
  0x72   : > { %p1108_p13 = pnand %p1107_p12, %p1103_p9 }
  0x74   : > { %1111 = shalt.err (!%p1108_p13)
}
  0x75   : > { %1030 = dma.vmem_to_hbm [thread:$0]  (%p1216_p4), %s894_s29, 1024, %s891_s3, %s877_s4  }
  0x76 PF: > { %p1036_p0 = scmp.ge.s32.totalorder %s1162_s11, 2  ;;  %s905_s24 = sand.u32 1, %s1142_s6  }
  0x77   : > { %s906_s25 = scalar_lea.sflag [#allocation3], %s905_s24 }
  0x78   : > { %p1033_p1 = pnand %p1036_p0, %p1223_p8 }
  0x7a   : > { %p1034_p2 = pneg %p1033_p1 }
  0x7c   : > { %1137 = dma.done.wait (%p1034_p2), %s906_s25, 1024  }
  0x7d   : > { %1139 = vsyncadd (%p1034_p2), %s906_s25, 4294966272  ;;  %s14_s11 = sadd.s32 1, %s1162_s11   ;;  %s1521_s6 = smov %s1146_s7 }
  0x7e   : > { %p11_p3 = scmp.ge.s32.totalorder %s14_s11, 4   ;;  %s1522_s7 = smov %s1150_s8 }
  0x7f   : > { %s1523_s8 = smov %s1229_s19  ;;  %s1524_s9 = smov %s1158_s10 }
  0x80   : > { %s1525_s10 = smov %s1527_s14  ;;  %13 = sbr.rel (!%p11_p3) target bundleno = 4 (0x4), region = 82 }
  0x85   :  { %911 = vsyncpa [#allocation3], 1 }
  0x86   :  { %913 = vsyncpa [#allocation3 + $0x1], 1 }

</bundles_post_ra>
